<compile_context>
chip_gen: v6e
topology: v6e:2x2x1
jax: 0.10.0
libtpu: 0.0.40
codegen_flags: <defaults>
</compile_context>

<pallas_src>
import functools

import jax
import jax.numpy as jnp
from jax.experimental import pallas as pl
from jax.experimental.pallas import tpu as pltpu


# Packed-vector row indices (all small f32 params live in one (8, W) array).
_ROW_BQKV, _ROW_BO, _ROW_G1, _ROW_BE1, _ROW_B1, _ROW_B2, _ROW_G2, _ROW_BE2 = range(8)


def _transformer_block_kernel(
    x_ref,        # (1, S, E)   bf16  one batch element
    wqkv_ref,     # (E, 3E)     bf16  packed q|k|v projection (q part pre-scaled by Dh**-0.5)
    wo_ref,       # (E, E)      bf16  attention output projection (in, out)
    w1_ref,       # (E, Hff)    bf16  FFN layer 1 (in, out)
    w2_ref,       # (Hff, E)    bf16  FFN layer 2 (in, out)
    vec_ref,      # (8, W)      f32   packed biases / LayerNorm params
    *out_refs,    # y_ref (1,S,E) f32 [, attn_ref (1,S,S) f32]
    n_heads, emit_attn,
):
    y_ref = out_refs[0]
    attn_ref = out_refs[1] if emit_attn else None

    x_bf = x_ref[0]                                   # (S, E) bf16
    S, E = x_bf.shape
    H = n_heads
    Dh = E // H
    Hff = w1_ref.shape[1]
    x = x_bf.astype(jnp.float32)                      # f32 for residual / LayerNorm math

    vec = vec_ref[...]
    bqkv = vec[_ROW_BQKV:_ROW_BQKV + 1, :3 * E]       # (1, 3E) (q part pre-scaled)
    bo   = vec[_ROW_BO:_ROW_BO + 1, :E]
    g1   = vec[_ROW_G1:_ROW_G1 + 1, :E]
    be1  = vec[_ROW_BE1:_ROW_BE1 + 1, :E]
    b1   = vec[_ROW_B1:_ROW_B1 + 1, :Hff]
    b2   = vec[_ROW_B2:_ROW_B2 + 1, :E]
    g2   = vec[_ROW_G2:_ROW_G2 + 1, :E]
    be2  = vec[_ROW_BE2:_ROW_BE2 + 1, :E]

    # ---- QKV: one lane-dense (S,E)@(E,3E) MXU pass with f32 accumulation ----
    qkv = jnp.dot(x_bf, wqkv_ref[...], preferred_element_type=jnp.float32) + bqkv   # (S, 3E)

    # Head split using only tile-aligned ops: 2-D transpose + leading-dim reshape
    # (the minor dim never changes; Dh is a multiple of the f32 sublane tile here).
    qkv_h = qkv.T.reshape(3 * H, Dh, S)                                  # (3H, Dh, S)
    qh   = jnp.transpose(qkv_h[:H], (0, 2, 1)).astype(jnp.bfloat16)     # (H, S, Dh)
    kh_t = qkv_h[H:2 * H].astype(jnp.bfloat16)                          # (H, Dh, S)
    vh_t = qkv_h[2 * H:].astype(jnp.bfloat16)                           # (H, Dh, S)

    # ---- scores + softmax (f32); attention scale already folded into wq/bq ----
    s = jnp.einsum("hqd,hdk->hqk", qh, kh_t,
                   preferred_element_type=jnp.float32)                  # (H, S, S)
    s = s - jnp.max(s, axis=-1, keepdims=True)
    e = jnp.exp(s)
    denom = jnp.sum(e, axis=-1, keepdims=True)
    # exact reciprocal when probabilities are emitted to HBM; approx (EUP slot) otherwise
    p = e * pl.reciprocal(denom, approx=not emit_attn)

    # ---- context, produced directly in transposed (H, Dh, Sq) layout ----
    ctx_t = jnp.einsum("hdk,hqk->hdq", vh_t, p.astype(jnp.bfloat16),
                       preferred_element_type=jnp.float32)              # (H, Dh, S)

    # ---- output projection: head-sum fused into the MXU contraction over E ----
    ctx_se = ctx_t.reshape(E, S).T.astype(jnp.bfloat16)                 # (S, E) head-major cols
    attn_out = jnp.dot(ctx_se, wo_ref[...],
                       preferred_element_type=jnp.float32) + bo         # (S, E)

    # TODO(synk): nn.Dropout layers are identity here (eval mode).

    def layer_norm(z, g, b):
        mu = jnp.mean(z, axis=-1, keepdims=True)
        zc = z - mu
        var = jnp.mean(zc * zc, axis=-1, keepdims=True)
        return zc * jax.lax.rsqrt(var + 1e-5) * g + b

    # norm1(x + attn_out)
    xm = layer_norm(x + attn_out, g1, be1)                               # (S, E) f32

    # Feed-forward: Linear -> ReLU -> (Dropout) -> Linear, bf16 operands / f32 accumulation
    h1 = jnp.dot(xm.astype(jnp.bfloat16), w1_ref[...],
                 preferred_element_type=jnp.float32) + b1                # (S, Hff)
    h1 = jnp.maximum(h1, 0.0)
    ff = jnp.dot(h1.astype(jnp.bfloat16), w2_ref[...],
                 preferred_element_type=jnp.float32) + b2                # (S, E)

    # norm2(ff + xm)
    out = layer_norm(ff + xm, g2, be2)

    y_ref[0] = out.astype(y_ref.dtype)
    if emit_attn:
        attn_ref[0] = (jnp.sum(p, axis=0) * (1.0 / H)).astype(attn_ref.dtype)


def _prepare_params(p, n_heads):
    """Pack / pre-transpose PyTorch-layout weights (one-time, free constant transform)."""
    E = p["w_out"].shape[0]
    Hff = p["w1"].shape[0]
    Dh = E // n_heads
    scale = float(Dh) ** -0.5

    w_in = jnp.asarray(p["w_in"], jnp.float32)            # (3E, E) rows = q|k|v out-features
    b_in = jnp.asarray(p["b_in"], jnp.float32).reshape(-1)
    # Fold the attention scale Dh**-0.5 into the q projection (weights + bias).
    w_in = w_in.at[:E].multiply(scale)
    b_in = b_in.at[:E].multiply(scale)

    W = max(3 * E, Hff, E)
    vec = jnp.zeros((8, W), jnp.float32)
    vec = vec.at[_ROW_BQKV, :3 * E].set(b_in)
    vec = vec.at[_ROW_BO, :E].set(jnp.asarray(p["b_out"], jnp.float32))
    vec = vec.at[_ROW_G1, :E].set(jnp.asarray(p["g1"], jnp.float32))
    vec = vec.at[_ROW_BE1, :E].set(jnp.asarray(p["be1"], jnp.float32))
    vec = vec.at[_ROW_B1, :Hff].set(jnp.asarray(p["b1"], jnp.float32))
    vec = vec.at[_ROW_B2, :E].set(jnp.asarray(p["b2"], jnp.float32))
    vec = vec.at[_ROW_G2, :E].set(jnp.asarray(p["g2"], jnp.float32))
    vec = vec.at[_ROW_BE2, :E].set(jnp.asarray(p["be2"], jnp.float32))

    return dict(
        wqkv=jnp.transpose(w_in).astype(jnp.bfloat16),                    # (E, 3E)
        wo=jnp.transpose(jnp.asarray(p["w_out"])).astype(jnp.bfloat16),   # (E, E)
        w1=jnp.transpose(jnp.asarray(p["w1"])).astype(jnp.bfloat16),      # (E, Hff)
        w2=jnp.transpose(jnp.asarray(p["w2"])).astype(jnp.bfloat16),      # (Hff, E)
        vec=vec,                                                          # (8, W) f32
    )


def _vmem_limit_bytes(S, E, Hff, H, emit_attn):
    """Tight additive per-program estimate; only streamed blocks counted double-buffered."""
    bf16, f32 = 2, 4
    Dh = E // H
    W = max(3 * E, Hff, E)
    # grid-invariant weights: single resident copy
    weights = (E * 3 * E + E * E + E * Hff + Hff * E) * bf16 + 8 * W * f32
    # streamed per-step blocks (pipeline double-buffers these)
    streamed = 2 * (S * E * bf16) + 2 * (S * E * f32) + (2 * S * S * f32 if emit_attn else 0)
    # in-kernel intermediates (not double-buffered)
    inter = (2 * S * 3 * E * f32                    # qkv + transposed copy
             + 3 * H * S * Dh * (f32 + bf16)        # q/k/v per-head views
             + 2 * H * S * S * f32 + H * S * S * bf16   # scores / probs
             + H * S * Dh * f32                     # context
             + 6 * S * E * f32 + 2 * S * Hff * f32) # residual / LN / FFN activations
    est = int((weights + streamed + inter) * 1.5) + (1 << 20)   # margin: tile padding, scratch
    try:
        cap = int(pltpu.get_tpu_info().vmem_capacity_bytes * 0.85)   # generation-aware cap
    except Exception:
        cap = 56 * 1024 * 1024                                       # safe for v7x (64 MiB)
    return max(16 * 1024 * 1024, min(est, cap))


def transformer_block(x_sbe, params, *, n_heads, output_attn_w=False):
    """x_sbe: (S, B, E) as in the PyTorch module (eval-mode forward)."""
    S, B, E = x_sbe.shape
    pp = _prepare_params(params, n_heads)
    Hff = pp["w1"].shape[1]

    # x/y are the only per-grid-step HBM streams (weights are resident): stream x in bf16.
    x_bse = jnp.transpose(x_sbe, (1, 0, 2)).astype(jnp.bfloat16)    # (B, S, E)

    weight_args = (pp["wqkv"], pp["wo"], pp["w1"], pp["w2"], pp["vec"])

    kernel = functools.partial(_transformer_block_kernel,
                               n_heads=n_heads, emit_attn=output_attn_w)

    in_specs = [pl.BlockSpec((1, S, E), lambda b: (b, 0, 0))]
    in_specs += [pl.BlockSpec(w.shape, lambda b: (0, 0)) for w in weight_args]  # grid-invariant

    if output_attn_w:
        out_specs = (pl.BlockSpec((1, S, E), lambda b: (b, 0, 0)),
                     pl.BlockSpec((1, S, S), lambda b: (b, 0, 0)))
        out_shape = (jax.ShapeDtypeStruct((B, S, E), jnp.float32),
                     jax.ShapeDtypeStruct((B, S, S), jnp.float32))
    else:
        # attention-weights output dropped entirely: no (B,S,S) writeback
        out_specs = pl.BlockSpec((1, S, E), lambda b: (b, 0, 0))
        out_shape = jax.ShapeDtypeStruct((B, S, E), jnp.float32)

    fn = pl.pallas_call(
        kernel,
        grid=(B,),
        in_specs=in_specs,
        out_specs=out_specs,
        out_shape=out_shape,
        compiler_params=pltpu.CompilerParams(
            dimension_semantics=("parallel",),
            vmem_limit_bytes=_vmem_limit_bytes(S, E, Hff, n_heads, output_attn_w)),
    )
    outs = fn(x_bse, *weight_args)

    if output_attn_w:
        y_bse, attn_w = outs
        return jnp.transpose(y_bse, (1, 0, 2)), attn_w
    return jnp.transpose(outs, (1, 0, 2))


# ----------------- pure-JAX f32 reference (for correctness check) -----------------
def _ref_forward(x_sbe, p, n_heads):
    S, B, E = x_sbe.shape
    Dh = E // n_heads
    x = x_sbe.astype(jnp.float32)
    qkv = jnp.einsum("sbe,fe->sbf", x, p["w_in"]) + p["b_in"]      # (S, B, 3E)
    q, k, v = jnp.split(qkv, 3, axis=-1)

    def heads(t):  # (S, B, E) -> (B, H, S, Dh)
        return t.reshape(S, B, n_heads, Dh).transpose(1, 2, 0, 3)

    qh, kh, vh = heads(q), heads(k), heads(v)
    scores = jnp.einsum("bhsd,bhtd->bhst", qh, kh) / jnp.sqrt(jnp.float32(Dh))
    attn = jax.nn.softmax(scores, axis=-1)
    ctx = jnp.einsum("bhst,bhtd->bhsd", attn, vh)                  # (B, H, S, Dh)
    ctx = ctx.transpose(2, 0, 1, 3).reshape(S, B, E)
    attn_out = ctx @ p["w_out"].T + p["b_out"]

    def ln(z, g, b):
        mu = z.mean(-1, keepdims=True)
        var = ((z - mu) ** 2).mean(-1, keepdims=True)
        return (z - mu) / jnp.sqrt(var + 1e-5) * g + b

    xm = ln(x + attn_out, p["g1"], p["be1"])
    ff = jnp.maximum(xm @ p["w1"].T + p["b1"], 0.0) @ p["w2"].T + p["b2"]
    out = ln(ff + xm, p["g2"], p["be2"])
    return out, attn.mean(axis=1)   # (S,B,E), (B,S,S)


def _init_params(key, embed_dim, n_hidden):
    E, Hff = embed_dim, n_hidden
    ks = jax.random.split(key, 6)
    return {
        "w_in":  0.1 * jax.random.normal(ks[0], (3 * E, E), jnp.float32),
        "b_in":  0.01 * jax.random.normal(ks[1], (3 * E,), jnp.float32),
        "w_out": 0.1 * jax.random.normal(ks[2], (E, E), jnp.float32),
        "b_out": jnp.zeros((E,), jnp.float32),
        "g1":    jnp.ones((E,), jnp.float32),
        "be1":   jnp.zeros((E,), jnp.float32),
        "w1":    0.1 * jax.random.normal(ks[3], (Hff, E), jnp.float32),
        "b1":    0.01 * jax.random.normal(ks[4], (Hff,), jnp.float32),
        "w2":    0.1 * jax.random.normal(ks[5], (E, Hff), jnp.float32),
        "b2":    jnp.zeros((E,), jnp.float32),
        "g2":    jnp.ones((E,), jnp.float32),
        "be2":   jnp.zeros((E,), jnp.float32),
    }


if __name__ == "__main__":
    S, B, E = 8, 2, 32
    n_heads, n_hidden = 4, 64

    key = jax.random.PRNGKey(0)
    kx, kp = jax.random.split(key)
    x = jax.random.normal(kx, (S, B, E), jnp.float32)
    params = _init_params(kp, E, n_hidden)

    # Path with attention-weights output
    y, attn_w = transformer_block(x, params, n_heads=n_heads, output_attn_w=True)
    y = jax.block_until_ready(y)
    attn_w = jax.block_until_ready(attn_w)

    y_ref, attn_ref = _ref_forward(x, params, n_heads)
    assert y.shape == (S, B, E) and attn_w.shape == (B, S, S)
    # bf16 streamed input + bf16 matmul operands => relaxed tolerance vs f32 reference
    assert jnp.allclose(y, y_ref, rtol=5e-2, atol=5e-2), "output mismatch vs reference"
    assert jnp.allclose(attn_w, attn_ref, rtol=5e-2, atol=5e-2), "attn mismatch vs reference"

    # Path without attention-weights output (no (B,S,S) writeback)
    y2 = jax.block_until_ready(
        transformer_block(x, params, n_heads=n_heads, output_attn_w=False))
    assert y2.shape == (S, B, E)
    assert jnp.allclose(y2, y_ref, rtol=5e-2, atol=5e-2), "output mismatch (no-attn path)"

    print("KERNEL_OK")
</pallas_src>

<mosaic_0001>
module attributes {stable_mosaic.version = 11 : i64} {
  func.func @_transformer_block_kernel(%arg0: i32, %arg1: memref<1x8x32xbf16, #tpu.memory_space<vmem>>, %arg2: memref<32x96xbf16, #tpu.memory_space<vmem>>, %arg3: memref<32x32xbf16, #tpu.memory_space<vmem>>, %arg4: memref<32x64xbf16, #tpu.memory_space<vmem>>, %arg5: memref<64x32xbf16, #tpu.memory_space<vmem>>, %arg6: memref<8x96xf32, #tpu.memory_space<vmem>>, %arg7: memref<1x8x32xf32, #tpu.memory_space<vmem>>, %arg8: memref<1x8x8xf32, #tpu.memory_space<vmem>>) attributes {dimension_semantics = [#tpu.dimension_semantics<parallel>], iteration_bounds = array<i64: 2>, scalar_prefetch = 0 : i64, scratch_operands = 0 : i64, tpu.core_type = #tpu.core_type<tc>, window_params = [{transform_indices = @transform_0, window_bounds = array<i64: 1, 8, 32>}, {pipeline_mode = #tpu.pipeline_mode<synchronous>, transform_indices = @transform_1, window_bounds = array<i64: 32, 96>}, {pipeline_mode = #tpu.pipeline_mode<synchronous>, transform_indices = @transform_2, window_bounds = array<i64: 32, 32>}, {pipeline_mode = #tpu.pipeline_mode<synchronous>, transform_indices = @transform_3, window_bounds = array<i64: 32, 64>}, {pipeline_mode = #tpu.pipeline_mode<synchronous>, transform_indices = @transform_4, window_bounds = array<i64: 64, 32>}, {pipeline_mode = #tpu.pipeline_mode<synchronous>, transform_indices = @transform_5, window_bounds = array<i64: 8, 96>}, {transform_indices = @transform_6, window_bounds = array<i64: 1, 8, 32>}, {transform_indices = @transform_7, window_bounds = array<i64: 1, 8, 8>}]} {
    %c0 = arith.constant 0 : index
    %c0_0 = arith.constant 0 : index
    %c0_1 = arith.constant 0 : index
    %0 = vector.load %arg1[%c0, %c0_0, %c0_1] : memref<1x8x32xbf16, #tpu.memory_space<vmem>>, vector<1x8x32xbf16>
    %1 = vector.shape_cast %0 : vector<1x8x32xbf16> to vector<8x32xbf16>
    %2 = arith.extf %1 : vector<8x32xbf16> to vector<8x32xf32>
    %c0_2 = arith.constant 0 : index
    %c0_3 = arith.constant 0 : index
    %3 = vector.load %arg6[%c0_2, %c0_3] : memref<8x96xf32, #tpu.memory_space<vmem>>, vector<8x96xf32>
    %4 = vector.extract_strided_slice %3 {offsets = [0, 0], sizes = [1, 96], strides = [1, 1]} : vector<8x96xf32> to vector<1x96xf32>
    %5 = vector.extract_strided_slice %3 {offsets = [1, 0], sizes = [1, 32], strides = [1, 1]} : vector<8x96xf32> to vector<1x32xf32>
    %6 = vector.extract_strided_slice %3 {offsets = [2, 0], sizes = [1, 32], strides = [1, 1]} : vector<8x96xf32> to vector<1x32xf32>
    %7 = vector.extract_strided_slice %3 {offsets = [3, 0], sizes = [1, 32], strides = [1, 1]} : vector<8x96xf32> to vector<1x32xf32>
    %8 = vector.extract_strided_slice %3 {offsets = [4, 0], sizes = [1, 64], strides = [1, 1]} : vector<8x96xf32> to vector<1x64xf32>
    %9 = vector.extract_strided_slice %3 {offsets = [5, 0], sizes = [1, 32], strides = [1, 1]} : vector<8x96xf32> to vector<1x32xf32>
    %10 = vector.extract_strided_slice %3 {offsets = [6, 0], sizes = [1, 32], strides = [1, 1]} : vector<8x96xf32> to vector<1x32xf32>
    %11 = vector.extract_strided_slice %3 {offsets = [7, 0], sizes = [1, 32], strides = [1, 1]} : vector<8x96xf32> to vector<1x32xf32>
    %c0_4 = arith.constant 0 : index
    %c0_5 = arith.constant 0 : index
    %12 = vector.load %arg2[%c0_4, %c0_5] : memref<32x96xbf16, #tpu.memory_space<vmem>>, vector<32x96xbf16>
    %cst = arith.constant dense<0.000000e+00> : vector<8x96xf32>
    %13 = tpu.matmul %1, %12, %cst {dimension_numbers = #tpu.dot_dimension_numbers<[1], [0], [0], [1], [0, 0, 1, 1], [], []>} : vector<8x32xbf16>, vector<32x96xbf16>, vector<8x96xf32> -> vector<8x96xf32>
    %14 = vector.broadcast %4 : vector<1x96xf32> to vector<8x96xf32>
    %15 = arith.addf %13, %14 : vector<8x96xf32>
    %16 = tpu.transpose %15, [1, 0] : vector<8x96xf32> -> vector<96x8xf32>
    %17 = vector.shape_cast %16 : vector<96x8xf32> to vector<12x8x8xf32>
    %18 = vector.extract_strided_slice %17 {offsets = [0, 0, 0], sizes = [4, 8, 8], strides = [1, 1, 1]} : vector<12x8x8xf32> to vector<4x8x8xf32>
    %19 = tpu.transpose %18, [0, 2, 1] : vector<4x8x8xf32> -> vector<4x8x8xf32>
    %20 = arith.truncf %19 : vector<4x8x8xf32> to vector<4x8x8xbf16>
    %21 = vector.extract_strided_slice %17 {offsets = [4, 0, 0], sizes = [4, 8, 8], strides = [1, 1, 1]} : vector<12x8x8xf32> to vector<4x8x8xf32>
    %22 = arith.truncf %21 : vector<4x8x8xf32> to vector<4x8x8xbf16>
    %23 = vector.extract_strided_slice %17 {offsets = [8, 0, 0], sizes = [4, 8, 8], strides = [1, 1, 1]} : vector<12x8x8xf32> to vector<4x8x8xf32>
    %24 = arith.truncf %23 : vector<4x8x8xf32> to vector<4x8x8xbf16>
    "tpu.trace_start"() <{level = 10 : i32, message = "hqd,hdk->hqk"}> : () -> ()
    %cst_6 = arith.constant dense<0.000000e+00> : vector<4x8x8xf32>
    %25 = tpu.matmul %20, %22, %cst_6 {dimension_numbers = #tpu.dot_dimension_numbers<[2], [1], [1], [2], [0, 0, 0, 1, 1, 2], [0], [0]>} : vector<4x8x8xbf16>, vector<4x8x8xbf16>, vector<4x8x8xf32> -> vector<4x8x8xf32>
    "tpu.trace_stop"() : () -> ()
    %cst_7 = arith.constant dense<0xFF800000> : vector<4x8xf32>
    %26 = vector.multi_reduction <maximumf>, %25, %cst_7 [2] : vector<4x8x8xf32> to vector<4x8xf32>
    %27 = vector.shape_cast %26 : vector<4x8xf32> to vector<4x8x1xf32>
    %28 = vector.broadcast %27 : vector<4x8x1xf32> to vector<4x8x8xf32>
    %29 = arith.subf %25, %28 : vector<4x8x8xf32>
    %30 = math.exp %29 : vector<4x8x8xf32>
    %cst_8 = arith.constant dense<0.000000e+00> : vector<4x8xf32>
    %31 = vector.multi_reduction <add>, %30, %cst_8 [2] : vector<4x8x8xf32> to vector<4x8xf32>
    %32 = vector.shape_cast %31 : vector<4x8xf32> to vector<4x8x1xf32>
    %33 = tpu.reciprocal %32 : vector<4x8x1xf32> -> vector<4x8x1xf32>
    %34 = vector.broadcast %33 : vector<4x8x1xf32> to vector<4x8x8xf32>
    %35 = arith.mulf %30, %34 : vector<4x8x8xf32>
    %36 = arith.truncf %35 : vector<4x8x8xf32> to vector<4x8x8xbf16>
    "tpu.trace_start"() <{level = 10 : i32, message = "hdk,hqk->hdq"}> : () -> ()
    %cst_9 = arith.constant dense<0.000000e+00> : vector<4x8x8xf32>
    %37 = tpu.matmul %24, %36, %cst_9 {dimension_numbers = #tpu.dot_dimension_numbers<[2], [2], [1], [1], [0, 0, 0, 1, 1, 1], [0], [0]>} : vector<4x8x8xbf16>, vector<4x8x8xbf16>, vector<4x8x8xf32> -> vector<4x8x8xf32>
    "tpu.trace_stop"() : () -> ()
    %38 = vector.shape_cast %37 : vector<4x8x8xf32> to vector<32x8xf32>
    %39 = tpu.transpose %38, [1, 0] : vector<32x8xf32> -> vector<8x32xf32>
    %40 = arith.truncf %39 : vector<8x32xf32> to vector<8x32xbf16>
    %c0_10 = arith.constant 0 : index
    %c0_11 = arith.constant 0 : index
    %41 = vector.load %arg3[%c0_10, %c0_11] : memref<32x32xbf16, #tpu.memory_space<vmem>>, vector<32x32xbf16>
    %cst_12 = arith.constant dense<0.000000e+00> : vector<8x32xf32>
    %42 = tpu.matmul %40, %41, %cst_12 {dimension_numbers = #tpu.dot_dimension_numbers<[1], [0], [0], [1], [0, 0, 1, 1], [], []>} : vector<8x32xbf16>, vector<32x32xbf16>, vector<8x32xf32> -> vector<8x32xf32>
    %43 = vector.broadcast %5 : vector<1x32xf32> to vector<8x32xf32>
    %44 = arith.addf %42, %43 : vector<8x32xf32>
    %45 = arith.addf %2, %44 : vector<8x32xf32>
    %cst_13 = arith.constant dense<0.000000e+00> : vector<8xf32>
    %46 = vector.multi_reduction <add>, %45, %cst_13 [1] : vector<8x32xf32> to vector<8xf32>
    %47 = vector.shape_cast %46 : vector<8xf32> to vector<8x1xf32>
    %cst_14 = arith.constant 3.200000e+01 : f32
    %48 = vector.broadcast %cst_14 : f32 to vector<8x1xf32>
    %49 = arith.divf %47, %48 : vector<8x1xf32>
    %50 = vector.broadcast %49 : vector<8x1xf32> to vector<8x32xf32>
    %51 = arith.subf %45, %50 : vector<8x32xf32>
    %52 = arith.mulf %51, %51 : vector<8x32xf32>
    %cst_15 = arith.constant dense<0.000000e+00> : vector<8xf32>
    %53 = vector.multi_reduction <add>, %52, %cst_15 [1] : vector<8x32xf32> to vector<8xf32>
    %54 = vector.shape_cast %53 : vector<8xf32> to vector<8x1xf32>
    %cst_16 = arith.constant 3.200000e+01 : f32
    %55 = vector.broadcast %cst_16 : f32 to vector<8x1xf32>
    %56 = arith.divf %54, %55 : vector<8x1xf32>
    %cst_17 = arith.constant 9.99999974E-6 : f32
    %57 = vector.broadcast %cst_17 : f32 to vector<8x1xf32>
    %58 = arith.addf %56, %57 : vector<8x1xf32>
    %59 = math.rsqrt %58 : vector<8x1xf32>
    %60 = vector.broadcast %59 : vector<8x1xf32> to vector<8x32xf32>
    %61 = arith.mulf %51, %60 : vector<8x32xf32>
    %62 = vector.broadcast %6 : vector<1x32xf32> to vector<8x32xf32>
    %63 = arith.mulf %61, %62 : vector<8x32xf32>
    %64 = vector.broadcast %7 : vector<1x32xf32> to vector<8x32xf32>
    %65 = arith.addf %63, %64 : vector<8x32xf32>
    %66 = arith.truncf %65 : vector<8x32xf32> to vector<8x32xbf16>
    %c0_18 = arith.constant 0 : index
    %c0_19 = arith.constant 0 : index
    %67 = vector.load %arg4[%c0_18, %c0_19] : memref<32x64xbf16, #tpu.memory_space<vmem>>, vector<32x64xbf16>
    %cst_20 = arith.constant dense<0.000000e+00> : vector<8x64xf32>
    %68 = tpu.matmul %66, %67, %cst_20 {dimension_numbers = #tpu.dot_dimension_numbers<[1], [0], [0], [1], [0, 0, 1, 1], [], []>} : vector<8x32xbf16>, vector<32x64xbf16>, vector<8x64xf32> -> vector<8x64xf32>
    %69 = vector.broadcast %8 : vector<1x64xf32> to vector<8x64xf32>
    %70 = arith.addf %68, %69 : vector<8x64xf32>
    %cst_21 = arith.constant 0.000000e+00 : f32
    %71 = vector.broadcast %cst_21 : f32 to vector<8x64xf32>
    %72 = arith.maximumf %70, %71 : vector<8x64xf32>
    %73 = arith.truncf %72 : vector<8x64xf32> to vector<8x64xbf16>
    %c0_22 = arith.constant 0 : index
    %c0_23 = arith.constant 0 : index
    %74 = vector.load %arg5[%c0_22, %c0_23] : memref<64x32xbf16, #tpu.memory_space<vmem>>, vector<64x32xbf16>
    %cst_24 = arith.constant dense<0.000000e+00> : vector<8x32xf32>
    %75 = tpu.matmul %73, %74, %cst_24 {dimension_numbers = #tpu.dot_dimension_numbers<[1], [0], [0], [1], [0, 0, 1, 1], [], []>} : vector<8x64xbf16>, vector<64x32xbf16>, vector<8x32xf32> -> vector<8x32xf32>
    %76 = vector.broadcast %9 : vector<1x32xf32> to vector<8x32xf32>
    %77 = arith.addf %75, %76 : vector<8x32xf32>
    %78 = arith.addf %77, %65 : vector<8x32xf32>
    %cst_25 = arith.constant dense<0.000000e+00> : vector<8xf32>
    %79 = vector.multi_reduction <add>, %78, %cst_25 [1] : vector<8x32xf32> to vector<8xf32>
    %80 = vector.shape_cast %79 : vector<8xf32> to vector<8x1xf32>
    %cst_26 = arith.constant 3.200000e+01 : f32
    %81 = vector.broadcast %cst_26 : f32 to vector<8x1xf32>
    %82 = arith.divf %80, %81 : vector<8x1xf32>
    %83 = vector.broadcast %82 : vector<8x1xf32> to vector<8x32xf32>
    %84 = arith.subf %78, %83 : vector<8x32xf32>
    %85 = arith.mulf %84, %84 : vector<8x32xf32>
    %cst_27 = arith.constant dense<0.000000e+00> : vector<8xf32>
    %86 = vector.multi_reduction <add>, %85, %cst_27 [1] : vector<8x32xf32> to vector<8xf32>
    %87 = vector.shape_cast %86 : vector<8xf32> to vector<8x1xf32>
    %cst_28 = arith.constant 3.200000e+01 : f32
    %88 = vector.broadcast %cst_28 : f32 to vector<8x1xf32>
    %89 = arith.divf %87, %88 : vector<8x1xf32>
    %cst_29 = arith.constant 9.99999974E-6 : f32
    %90 = vector.broadcast %cst_29 : f32 to vector<8x1xf32>
    %91 = arith.addf %89, %90 : vector<8x1xf32>
    %92 = math.rsqrt %91 : vector<8x1xf32>
    %93 = vector.broadcast %92 : vector<8x1xf32> to vector<8x32xf32>
    %94 = arith.mulf %84, %93 : vector<8x32xf32>
    %95 = vector.broadcast %10 : vector<1x32xf32> to vector<8x32xf32>
    %96 = arith.mulf %94, %95 : vector<8x32xf32>
    %97 = vector.broadcast %11 : vector<1x32xf32> to vector<8x32xf32>
    %98 = arith.addf %96, %97 : vector<8x32xf32>
    %c0_30 = arith.constant 0 : index
    %c0_31 = arith.constant 0 : index
    %c0_32 = arith.constant 0 : index
    %99 = vector.load %arg7[%c0_30, %c0_31, %c0_32] : memref<1x8x32xf32, #tpu.memory_space<vmem>>, vector<1x8x32xf32>
    %100 = vector.shape_cast %99 : vector<1x8x32xf32> to vector<8x32xf32>
    %101 = vector.shape_cast %98 : vector<8x32xf32> to vector<1x8x32xf32>
    tpu.vector_store %arg7[%c0_30, %c0_31, %c0_32], %101 {strides = array<i32>} : memref<1x8x32xf32, #tpu.memory_space<vmem>>, vector<1x8x32xf32>,
    %cst_33 = arith.constant dense<0.000000e+00> : vector<8x8xf32>
    %102 = vector.multi_reduction <add>, %35, %cst_33 [0] : vector<4x8x8xf32> to vector<8x8xf32>
    %cst_34 = arith.constant 2.500000e-01 : f32
    %103 = vector.broadcast %cst_34 : f32 to vector<8x8xf32>
    %104 = arith.mulf %102, %103 : vector<8x8xf32>
    %c0_35 = arith.constant 0 : index
    %c0_36 = arith.constant 0 : index
    %c0_37 = arith.constant 0 : index
    %105 = vector.load %arg8[%c0_35, %c0_36, %c0_37] : memref<1x8x8xf32, #tpu.memory_space<vmem>>, vector<1x8x8xf32>
    %106 = vector.shape_cast %105 : vector<1x8x8xf32> to vector<8x8xf32>
    %107 = vector.shape_cast %104 : vector<8x8xf32> to vector<1x8x8xf32>
    tpu.vector_store %arg8[%c0_35, %c0_36, %c0_37], %107 {strides = array<i32>} : memref<1x8x8xf32, #tpu.memory_space<vmem>>, vector<1x8x8xf32>,
    return
  }
  func.func @transform_0(%arg0: i32) -> (i32, i32, i32) {
    %c0_i32 = arith.constant 0 : i32
    %c0_i32_0 = arith.constant 0 : i32
    %c0_i32_1 = arith.constant 0 : i32
    return %arg0, %c0_i32, %c0_i32_0 : i32, i32, i32
  }
  func.func @transform_1(%arg0: i32) -> (i32, i32) {
    %c0_i32 = arith.constant 0 : i32
    %c0_i32_0 = arith.constant 0 : i32
    %c0_i32_1 = arith.constant 0 : i32
    return %c0_i32, %c0_i32_0 : i32, i32
  }
  func.func @transform_2(%arg0: i32) -> (i32, i32) {
    %c0_i32 = arith.constant 0 : i32
    %c0_i32_0 = arith.constant 0 : i32
    %c0_i32_1 = arith.constant 0 : i32
    return %c0_i32, %c0_i32_0 : i32, i32
  }
  func.func @transform_3(%arg0: i32) -> (i32, i32) {
    %c0_i32 = arith.constant 0 : i32
    %c0_i32_0 = arith.constant 0 : i32
    %c0_i32_1 = arith.constant 0 : i32
    return %c0_i32, %c0_i32_0 : i32, i32
  }
  func.func @transform_4(%arg0: i32) -> (i32, i32) {
    %c0_i32 = arith.constant 0 : i32
    %c0_i32_0 = arith.constant 0 : i32
    %c0_i32_1 = arith.constant 0 : i32
    return %c0_i32, %c0_i32_0 : i32, i32
  }
  func.func @transform_5(%arg0: i32) -> (i32, i32) {
    %c0_i32 = arith.constant 0 : i32
    %c0_i32_0 = arith.constant 0 : i32
    %c0_i32_1 = arith.constant 0 : i32
    return %c0_i32, %c0_i32_0 : i32, i32
  }
  func.func @transform_6(%arg0: i32) -> (i32, i32, i32) {
    %c0_i32 = arith.constant 0 : i32
    %c0_i32_0 = arith.constant 0 : i32
    %c0_i32_1 = arith.constant 0 : i32
    return %arg0, %c0_i32, %c0_i32_0 : i32, i32, i32
  }
  func.func @transform_7(%arg0: i32) -> (i32, i32, i32) {
    %c0_i32 = arith.constant 0 : i32
    %c0_i32_0 = arith.constant 0 : i32
    %c0_i32_1 = arith.constant 0 : i32
    return %arg0, %c0_i32, %c0_i32_0 : i32, i32, i32
  }
}

</mosaic_0001>

<bundles_post_ra>
// kernel: tpu_custom_call.1
= control target key start
LH: loop header
LB: loop body
LE: loop exit
PB: predicated region body
PF: predicated region fallthrough
CT: control target
= control target key end

     0   :  { %13 = vsyncpa [#allocation3], 0  ;;  %s2123_s0 = inlined_call_operand.hbm [shape: bf16[2,8,32], index: 0, kind: input, shape index: {}]   ;;  %s2124_s1 = inlined_call_operand.vmem [shape: bf16[32,96], index: 1, kind: input, shape index: {}]   ;;  %s2125_s2 = inlined_call_operand.vmem [shape: bf16[32,32], index: 2, kind: input, shape index: {}]   ;;  %s2126_s3 = inlined_call_operand.vmem [shape: bf16[32,64], index: 3, kind: input, shape index: {}]   ;;  %s2127_s4 = inlined_call_operand.vmem [shape: bf16[64,32], index: 4, kind: input, shape index: {}]   ;;  %s2128_s5 = inlined_call_operand.vmem [shape: f32[8,96], index: 5, kind: input, shape index: {}]   ;;  %s2129_s6 = inlined_call_operand.hbm [shape: f32[2,8,32], index: 6, kind: output, shape index: {0}]   ;;  %s2130_s7 = inlined_call_operand.hbm [shape: f32[2,8,8], index: 7, kind: output, shape index: {1}]  }
   0x1   :  { %15 = vsyncpa [#allocation3 + $0x1], 0 }
   0x2   :  { %16 = vsyncpa [#allocation4], 0 }
   0x3   :  { %18 = vsyncpa [#allocation4 + $0x1], 0 }
   0x4   :  { %19 = vsyncpa [#allocation7], 0 }
   0x5   :  { %21 = vsyncpa [#allocation7 + $0x1], 0  ;;  %s1801_s24 = smov 0   ;;  %s1803_s25 = smov 0  }
   0x6   :  { %s1805_s26 = smov 0   ;;  %s1807_s27 = smov 0  }
   0x7 LB: > { %s1822_s28 = sadd.s32 4294967295, %s1754_s27   ;;  %s1398_s29 = sadd.s32 4294967294, %s1754_s27   ;;  %s1754_s27 = sphi %s1807_s27, %s2151_s27   ;;  %s1750_s26 = sphi %s1805_s26, %s2150_s26   ;;  %s1746_s25 = sphi %s1803_s25, %s2149_s25   ;;  %s1742_s24 = sphi %s1801_s24, %s2148_s24  }
   0x8   : > { %s1826_s30 = sadd.s32 1, %s1754_s27   ;;  %s34_s8 = sadd.s32 1, %s1750_s26 }
   0x9   : > { %s31_s9 = ssub.s32 %s1754_s27, %s1826_s30  ;;  %p41_p0 = scmp.ne.s32.totalorder %s1750_s26, %s1746_s25 }
   0xa   : > { %p32_p1 = scmp.eq.s32.totalorder %s31_s9, 0  ;;  %p42_p2 = scmp.eq.s32.totalorder %s1754_s27, 0 }
   0xb   : > { %p47_p3 = scmp.ne.s32.totalorder %s1746_s25, %s1742_s24  ;;  %p48_p4 = scmp.eq.s32.totalorder %s1822_s28, 0 }
   0xc   : > { %s1838_s10 = scalar_select %p32_p1, %s1750_s26, %s34_s8  }
   0xd   : > { %p1840_p5 = por %p42_p2, %p41_p0  ;;  %p1844_p6 = por %p48_p4, %p47_p3 }
   0xe   : > { %p176_p7 = scmp.eq.s32.totalorder %s1822_s28, 1  ;;  %p182_p8 = scmp.eq.s32.totalorder %s1398_s29, 1 }
   0xf   : > { %s2136_s12 = scalar_select %p1844_p6, 1, 0 }
  0x10   : > { %p1566_p10 = scmp.lt.s32.totalorder %s1754_s27, 2  ;;  %p1851_p11 = por %p176_p7, %p41_p0 }
  0x11   : > { %p1855_p12 = por %p182_p8, %p47_p3  ;;  %s243_s15 = sand.u32 1, %s1750_s26  }
  0x12   : > { %s2137_s13 = scalar_select %p1851_p11, 1, 0 }
  0x13   : > { %s2138_s14 = scalar_select %p1855_p12, 1, 0 }
  0x14   : > { %s1402_s16 = sshll.u32 %s1754_s27, 6  ;;  %s1401_s17 = sshll.u32 %s243_s15, 2 }
  0x15   : > { %s1864_s20 = scalar_lea.hbm %s2123_s0, %s1402_s16  ;;  %s247_s21 = scalar_lea.vmem [#allocation2], %s1401_s17 }
  0x16   : > { %s254_s22 = sshll.u32 %s247_s21, 4  ;;  %p1868_p13 = pnand %p1566_p10, %p1840_p5  ;;  %s1872_s22 = int_to_ptr.vmem [resolvable:$true] %s254_s22 }
  0x17   : > { %s244_s29 = scalar_lea.sflag [#allocation3], %s243_s15  ;;  %s1632_s8 = scalar_lea.hbm %s1864_s20, 64 }
  0x18   : > { %p1633_p2 = scmp.ne.s32.totalorder %s1864_s20, %s1632_s8  ;;  %p1634_p3 = pneg %p1868_p13 }
  0x19   : > { %s1637_s11 = scalar_lea.hbm %s2123_s0, 128  ;;  %p1638_p5 = scmp.lt.s32.totalorder %s1864_s20, %s2123_s0 }
  0x1a   : > { %p1635_p4 = pnand %p1634_p3, %p1633_p2  ;;  %p1639_p8 = scmp.lt.s32.totalorder %s1637_s11, %s1632_s8 }
  0x1c   : > { %p1636_p7 = pneg %p1635_p4  ;;  %p1640_p10 = por %p1639_p8, %p1638_p5 }
  0x1e   : > { %p1641_p9 = pnand %p1640_p10, %p1636_p7 }
  0x20   : > { %1644 = shalt.err (!%p1641_p9)
}
  0x21   : > { %s1645_s15 = scalar_lea.vmem %s1872_s22, 64  ;;  %s1756_s19 = smov [#allocation2]  }
  0x22   : > { %p1646_p0 = scmp.ne.s32.totalorder %s1872_s22, %s1645_s15  ;;  %s1650_s21 = sshll.u32 %s1756_s19, 4  ;;  %s1651_s21 = int_to_ptr.vmem [resolvable:$false] %s1650_s21 }
  0x23   : > { %s1652_s9 = scalar_lea.vmem %s1651_s21, 128  ;;  %p1653_p4 = scmp.lt.s32.totalorder %s1872_s22, %s1651_s21 }
  0x24   : > { %p1648_p1 = pnand %p1646_p0, %p1634_p3  ;;  %p1654_p12 = scmp.lt.s32.totalorder %s1652_s9, %s1645_s15 }
  0x26   : > { %p1649_p2 = pneg %p1648_p1  ;;  %p1655_p11 = por %p1654_p12, %p1653_p4 }
  0x28   : > { %p1656_p6 = pnand %p1655_p11, %p1649_p2 }
  0x2a   : > { %1659 = shalt.err (!%p1656_p6)
}
  0x2b   : > { %1558 = dma.hbm_to_vmem [thread:$0]  (!%p1868_p13), %s1864_s20, 64, %s1872_s22, %s244_s29  }
  0x2c   : > { %p2140_p9 = scmp.lt.s32.totalorder %s1754_s27, 3  ;;  %p2141_p7 = scmp.ge.s32.totalorder %s1754_s27, 1 }
  0x2e   : > { %p260_p0 = pnand %p2141_p7, %p2140_p9 }
  0x2f   : > { %s1899_s8 = sand.u32 (!%p260_p0), 1, %s1746_s25   ;;  %p2142_p6 = scmp.ne.s32.totalorder (!%p260_p0), %s2136_s12, 0 }
  0x30   : > { %263 = sbr.rel (%p260_p0) target bundleno = 2582 (0xa16), region = 44  ;;  %s1404_s16 = sshll.u32 (!%p260_p0), %s1899_s8, 2 }
  0x31   : > { %s266_s11 = scalar_lea.sflag (!%p260_p0), [#allocation3], %s1899_s8  ;;  %s269_s17 = scalar_lea.vmem (!%p260_p0), [#allocation2], %s1404_s16 }
  0x35   : > { %1729 = dma.done.wait (%p2142_p6), %s266_s11, 64  }
  0x36   : > { %1731 = vsyncadd (%p2142_p6), %s266_s11, 4294967232  ;;  %v1757_v0 = vmov 0.0   ;;  %vm1758_vm0 = vmmov 0   ;;  %v1602_v1 = vld [vmem:[%s2124_s1 + $0x8] sm:$0xff]   ;;  %v1603_v2 = vld [vmem:[%s2124_s1] sm:$0xff]   ;;  %vm329_vm1 = vcmask 261120   ;;  %v313_v4 = vlaneseq }
  0x37   : > { %1465 = vmatprep.subr.bf16.mxu0 %v1757_v0  ;;  %1469 = vmatprep.mubr.msk.bf16.mxu0 %vm1758_vm0, %v1757_v0  ;;  %v1920_v3 = vld [vmem:[%s269_s17] sm:$0xf]  ;;  %vm549_vm2 = vcmask 1043456   ;;  %vm545_vm3 = vcmask 64512   ;;  %s2134_s15 = sshll.u32 %s1899_s8, 3  ;;  %vm1186_vm4 = vcmask 523264  }
  0x38   : > { %1473 = vmatprep.subr.bf16.mxu1 %v1757_v0  ;;  %1475 = vmatprep.mubr.msk.bf16.mxu1 %vm1758_vm0, %v1757_v0  ;;  %v1927_v5 = vshrl.u32 %v313_v4, 7  ;;  %v1933_v7 = vld [vmem:[%s2128_s5] sm:$0xff]  ;;  %s2002_s19 = scalar_lea.vmem [#allocation6], %s2134_s15  ;;  %s2133_s20 = sshll.u32 %s1822_s28, 7 }
  0x39   : > { %1466 = vmatpush3.bf16.msra.mxu0 %v1602_v1  ;;  %s1294_s12 = scalar_lea.hbm %s2130_s7, %s2133_s20  ;;  %s1296_s29 = sshll.u32 %s2002_s19, 4  ;;  %s1297_s29 = int_to_ptr.vmem [resolvable:$true] %s1296_s29 }
  0x3a   : > { %1467 = vmatprep.subr.bf16.mxu0 %v1757_v0  ;;  %v315_v6 = vsub.s32 0, %v1927_v5  ;;  %s1270_s18 = scalar_lea.sflag [#allocation7], %s1899_s8  ;;  %s1660_s21 = scalar_lea.vmem %s1297_s29, 128 }
  0x3b   : > { %p1661_p11 = scmp.ne.s32.totalorder %s1297_s29, %s1660_s21  ;;  %p2143_p12 = scmp.ne.s32.totalorder %s2137_s13, 0 }
  0x3c   : > { %v316_v8 = vrot.slane %v1933_v7, %v315_v6  ;;  %s1759_s9 = smov [#allocation6]  }
  0x3d   : > { %1468 = vmatpush3.bf16.msra.mxu0 %v1603_v2  ;;  %p1662_p13 = pnand %p1661_p11, %p2143_p12  ;;  %s1664_s16 = sshll.u32 %s1759_s9, 4  ;;  %s1665_s16 = int_to_ptr.vmem [resolvable:$false] %s1664_s16 }
  0x3e   : > { %1497 = vmatprep.subr.bf16.mxu0 %v1757_v0  ;;  %s1666_s11 = scalar_lea.vmem %s1665_s16, 256  ;;  %p1667_p3 = scmp.lt.s32.totalorder %s1297_s29, %s1665_s16 }
  0x3f   : > { %p1663_p1 = pneg %p1662_p13  ;;  %p1668_p5 = scmp.lt.s32.totalorder %s1666_s11, %s1660_s21 }
  0x40   : > { %1470 = vmatmul.mubr.msk.bf16.vlgmr.msra.gmra.mxu0 %vm329_vm1, %v1920_v3 }
  0x41   : > { %1499 = vmatprep.mubr.msk.bf16.mxu0 %vm1758_vm0, %v1757_v0  ;;  %p1669_p8 = por %p1668_p5, %p1667_p3 }
  0x43   : > { %p1670_p10 = pnand %p1669_p8, %p1663_p1 }
 0x100   : > { %v367_v9 = vpop.f32.mrf.mxu0 }
 0x101   : > { %v368_v10 = vadd.f32 %v367_v9, %v316_v8 }
 0x102   : > { %v1471_v11 = vpop.f32.mrf.mxu0 }
 0x103   : > { %373 = vxpose.xlu0.b32.start.end [1/1] (short) (narrow) %v368_v10, 96 }
 0x104   : > { %v370_v12 = vpop.f32.mrf.mxu0 }
 0x106   : > { %v1472_v13 = vpop.f32.mrf.mxu0 }
 0x17f   : > { %v389_v14 = vpop.trf.xlu0 }
 0x180   : > { %405 = vxpose.xlu0.b32.start.end [1/1] (short) (narrow) %v389_v14, 8 }
 0x183   : > { %v390_v15 = vpop.trf.xlu0 }
 0x184   : > { %437 = vxpose.xlu1.b32.start.end [1/1] (short) (narrow) %v390_v15, 8 }
 0x187   : > { %v391_v16 = vpop.trf.xlu0 }
 0x188   : > { %469 = vxpose.xlu1.b32.start.end [1/1] (short) (narrow) %v391_v16, 8 }
 0x18b   : > { %v392_v17 = vpop.trf.xlu0 }
 0x18c   : > { %501 = vxpose.xlu1.b32.start.end [1/1] (short) (narrow) %v392_v17, 8 }
 0x18f   : > { %v393_v18 = vpop.trf.xlu0 }
 0x190   : > { %v537_v19 = vpack.c.bf16 %v393_v18, %v393_v18 }
 0x192   : > { %v551_v20 = vsel %vm549_vm2, %v537_v19, 0 }
 0x193   : > { %1474 = vmatpush3.bf16.msra.mxu1 %v551_v20  ;;  %v394_v21 = vpop.trf.xlu0 }
 0x194   : > { %1479 = vmatprep.subr.bf16.mxu1 %v1757_v0  ;;  %v538_v28 = vpack.c.bf16 %v394_v21, %v394_v21 }
 0x196   : > { %v597_v31 = vsel %vm549_vm2, %v538_v28, 0 }
 0x197   : > { %v395_v22 = vpop.trf.xlu0 }
 0x198   : > { %v539_v33 = vpack.c.bf16 %v395_v22, %v395_v22 }
 0x19a   : > { %v643_v35 = vsel %vm549_vm2, %v539_v33, 0 }
 0x19b   : > { %v396_v23 = vpop.trf.xlu0 }
 0x19c   : > { %v540_v37 = vpack.c.bf16 %v396_v23, %v396_v23 }
 0x19e   : > { %v689_v39 = vsel %vm549_vm2, %v540_v37, 0 }
 0x19f   : > { %v1938_v24 = vpop.trf.xlu0 }
 0x1a3   : > { %v1940_v25 = vpop.trf.xlu0 }
 0x1a7   : > { %v1942_v26 = vpop.trf.xlu0 }
 0x1ab   : > { %v1944_v27 = vpop.trf.xlu0 }
 0x1fc   : > { %v421_v29 = vpop.trf.xlu0 }
 0x1fd   : > { %v533_v30 = vpack.c.bf16 %v421_v29, %v421_v29 }
 0x1ff   : > { %1476 = vmatmul.mubr.msk.bf16.vlgmr.msra.gmra.mxu1 %vm545_vm3, %v533_v30 }
 0x200   : > { %1480 = vmatpush3.bf16.msra.mxu1 %v597_v31  ;;  %v453_v32 = vpop.trf.xlu1  ;;  %1481 = vmatprep.mubr.msk.bf16.mxu1 %vm1758_vm0, %v1757_v0 }
 0x201   : > { %1485 = vmatprep.subr.bf16.mxu1 %v1757_v0  ;;  %v534_v34 = vpack.c.bf16 %v453_v32, %v453_v32 }
 0x204   : > { %v485_v36 = vpop.trf.xlu1 }
 0x205   : > { %v535_v38 = vpack.c.bf16 %v485_v36, %v485_v36  ;;  %v541_v36 = vpack.c.bf16 %v1938_v24, %v1938_v24 }
 0x207   : > { %1482 = vmatmul.mubr.msk.bf16.vlgmr.msra.gmra.mxu1 %vm545_vm3, %v534_v34 }
 0x208   : > { %1486 = vmatpush3.bf16.msra.mxu1 %v643_v35  ;;  %1487 = vmatprep.mubr.msk.bf16.mxu1 %vm1758_vm0, %v1757_v0  ;;  %v517_v40 = vpop.trf.xlu1 }
 0x209   : > { %1491 = vmatprep.subr.bf16.mxu1 %v1757_v0  ;;  %v536_v41 = vpack.c.bf16 %v517_v40, %v517_v40 }
 0x20f   : > { %1488 = vmatmul.mubr.msk.bf16.vlgmr.msra.gmra.mxu1 %vm545_vm3, %v535_v38 }
 0x210   : > { %1492 = vmatpush3.bf16.msra.mxu1 %v689_v39  ;;  %1493 = vmatprep.mubr.msk.bf16.mxu1 %vm1758_vm0, %v1757_v0 }
 0x211   : > { %1503 = vmatprep.subr.bf16.mxu1 %v1757_v0 }
 0x217   : > { %1494 = vmatmul.mubr.msk.bf16.vlgmr.msra.gmra.mxu1 %vm545_vm3, %v536_v41  ;;  %v542_v41 = vpack.c.bf16 %v1940_v25, %v1940_v25 }
 0x218   : > { %1505 = vmatprep.mubr.msk.bf16.mxu1 %vm1758_vm0, %v1757_v0 }
 0x2bf   : > { %v587_v42 = vpop.f32.mrf.mxu1 }
 0x2c0   : > { %v731_v43 = vsel %vm545_vm3, %v587_v42, -inf }
 0x2c1   : > { %732 = vmax.xlane.f32.xlu1 %v731_v43  ;;  %v1477_v44 = vpop.f32.mrf.mxu1 }
 0x2c3   : > { %v590_v45 = vpop.f32.mrf.mxu1 }
 0x2c5   : > { %v1478_v46 = vpop.f32.mrf.mxu1 }
 0x2c7   : > { %v633_v47 = vpop.f32.mrf.mxu1 }
 0x2c8   : > { %v734_v48 = vsel %vm545_vm3, %v633_v47, -inf }
 0x2c9   : > { %735 = vmax.xlane.f32.xlu0 %v734_v48  ;;  %v1483_v49 = vpop.f32.mrf.mxu1 }
 0x2ca   : > { %v543_v49 = vpack.c.bf16 %v1942_v26, %v1942_v26  ;;  %v544_v26 = vpack.c.bf16 %v1944_v27, %v1944_v27 }
 0x2cb   : > { %v636_v50 = vpop.f32.mrf.mxu1 }
 0x2cd   : > { %v1484_v51 = vpop.f32.mrf.mxu1 }
 0x2cf   : > { %v679_v52 = vpop.f32.mrf.mxu1 }
 0x2d0   : > { %v737_v53 = vsel %vm545_vm3, %v679_v52, -inf }
 0x2d1   : > { %738 = vmax.xlane.f32.xlu1 %v737_v53  ;;  %v1489_v54 = vpop.f32.mrf.mxu1 }
 0x2d3   : > { %v682_v55 = vpop.f32.mrf.mxu1 }
 0x2d4   : > { %v1604_v55 = vld [vmem:[%s2125_s2 + $0x8] sm:$0xff]  }
 0x2d5   : > { %v1490_v56 = vpop.f32.mrf.mxu1 }
 0x2d6   : > { %v1605_v56 = vld [vmem:[%s2125_s2] sm:$0xff]  }
 0x2d7   : > { %v725_v57 = vpop.f32.mrf.mxu1 }
 0x2d8   : > { %v740_v58 = vsel %vm545_vm3, %v725_v57, -inf }
 0x2d9   : > { %741 = vmax.xlane.f32.xlu1 %v740_v58  ;;  %v1495_v59 = vpop.f32.mrf.mxu1 }
 0x2db   : > { %v728_v60 = vpop.f32.mrf.mxu1 }
 0x2dd   : > { %v1496_v61 = vpop.f32.mrf.mxu1 }
 0x34a   : > { %v733_v62 = vpop.xlane.xlu1 %732 }
 0x34b   : > { %v743_v63 = vsub.f32 %v587_v42, %v733_v62 }
 0x34d   : > { %v747_v1 = vmul.f32 1.442695, %v743_v63 }
 0x34f   : > { %1612 = vpow2.f32 %v747_v1 }
 0x352   : > { %v736_v2 = vpop.xlane.xlu0 %735 }
 0x353   : > { %v744_v4 = vsub.f32 %v633_v47, %v736_v2 }
 0x355   : > { %v749_v6 = vmul.f32 1.442695, %v744_v4 }
 0x357   : > { %1614 = vpow2.f32 %v749_v6 }
 0x35a   : > { %v739_v8 = vpop.xlane.xlu1 %738 }
 0x35b   : > { %v745_v9 = vsub.f32 %v679_v52, %v739_v8 }
 0x35c   : > { %v1613_v10 = vpop.eup %1612 }
 0x35d   : > { %v751_v11 = vmul.f32 1.442695, %v745_v9  ;;  %v755_v12 = vsel %vm545_vm3, %v1613_v10, 0.0 }
 0x35e   : > { %756 = vadd.xlane.f32.xlu1 %v755_v12 }
 0x35f   : > { %1616 = vpow2.f32 %v751_v11 }
 0x362   : > { %v742_v13 = vpop.xlane.xlu1 %741 }
 0x363   : > { %v746_v14 = vsub.f32 %v725_v57, %v742_v13 }
 0x364   : > { %v1615_v15 = vpop.eup %1614 }
 0x365   : > { %v753_v16 = vmul.f32 1.442695, %v746_v14  ;;  %v758_v17 = vsel %vm545_vm3, %v1615_v15, 0.0  ;;  %v1002_v14 = vsub.s32 1, %v1927_v5 }
 0x366   : > { %759 = vadd.xlane.f32.xlu1 %v758_v17 }
 0x367   : > { %1618 = vpow2.f32 %v753_v16  ;;  %v307_v16 = vunpack.c.l.bf16 %v1920_v3  ;;  %v1606_v3 = vld [vmem:[%s2126_s3 + $0x8] sm:$0xff]  }
 0x36c   : > { %v1617_v18 = vpop.eup %1616 }
 0x36d   : > { %v761_v19 = vsel %vm545_vm3, %v1617_v18, 0.0 }
 0x36e   : > { %762 = vadd.xlane.f32.xlu1 %v761_v19 }
 0x374   : > { %v1619_v20 = vpop.eup %1618 }
 0x375   : > { %v764_v21 = vsel %vm545_vm3, %v1619_v20, 0.0 }
 0x376   : > { %765 = vadd.xlane.f32.xlu1 %v764_v21 }
 0x3e7   : > { %v757_v22 = vpop.xlane.xlu1 %756 }
 0x3e8   : > { %1620 = vrcp.f32 %v757_v22 }
 0x3ef   : > { %v760_v23 = vpop.xlane.xlu1 %759 }
 0x3f0   : > { %1622 = vrcp.f32 %v760_v23 }
 0x3f5   : > { %v1621_v28 = vpop.eup %1620 }
 0x3f6   : > { %v771_v29 = vmul.f32 %v1621_v28, %v1613_v10 }
 0x3f7   : > { %v763_v30 = vpop.xlane.xlu1 %762 }
 0x3f8   : > { %1624 = vrcp.f32 %v763_v30  ;;  %v775_v31 = vpack.c.bf16 %v771_v29, %v771_v29  ;;  %v1255_v44 = vsel %vm545_vm3, %v771_v29, 0.0 }
 0x3fa   : > { %v783_v32 = vsel %vm545_vm3, %v775_v31, 0 }
 0x3fb   : > { %1498 = vmatpush3.bf16.xpose.msra.mxu0 %v783_v32 }
 0x3fc   : > { %1509 = vmatprep.subr.bf16.mxu0 %v1757_v0 }
 0x3fd   : > { %v1623_v33 = vpop.eup %1622 }
 0x3fe   : > { %v772_v34 = vmul.f32 %v1623_v33, %v1615_v15  ;;  %v1003_v15 = vrot.slane %v1933_v7, %v1002_v14  ;;  %v1607_v33 = vld [vmem:[%s2126_s3] sm:$0xff]  }
 0x3ff   : > { %v766_v35 = vpop.xlane.xlu1 %765 }
 0x400   : > { %1626 = vrcp.f32 %v766_v35  ;;  %v776_v37 = vpack.c.bf16 %v772_v34, %v772_v34  ;;  %v1256_v24 = vsel %vm545_vm3, %v772_v34, 0.0  ;;  %v1608_v34 = vld [vmem:[%s2127_s4 + $0x18] sm:$0xff]   ;;  %v1609_v35 = vld [vmem:[%s2127_s4 + $0x10] sm:$0xff]  }
 0x401   : > { %v1257_v25 = vadd.f32 %v1256_v24, %v1255_v44 }
 0x402   : > { %1500 = vmatmul.mubr.msk.bf16.vlgmr.msra.gmra.mxu0 %vm545_vm3, %v541_v36  ;;  %v829_v38 = vsel %vm545_vm3, %v776_v37, 0 }
 0x403   : > { %1504 = vmatpush3.bf16.xpose.msra.mxu1 %v829_v38  ;;  %1511 = vmatprep.mubr.msk.bf16.mxu0 %vm1758_vm0, %v1757_v0 }
 0x404   : > { %1515 = vmatprep.subr.bf16.mxu1 %v1757_v0 }
 0x405   : > { %v1625_v39 = vpop.eup %1624 }
 0x406   : > { %v773_v40 = vmul.f32 %v1625_v39, %v1617_v18  ;;  %v1076_v39 = vsub.s32 2, %v1927_v5 }
 0x408   : > { %v777_v42 = vpack.c.bf16 %v773_v40, %v773_v40  ;;  %v1258_v45 = vsel %vm545_vm3, %v773_v40, 0.0  ;;  %v1081_v40 = vsub.s32 3, %v1927_v5 }
 0x409   : > { %v1259_v48 = vadd.f32 %v1258_v45, %v1257_v25  ;;  %v1610_v25 = vld [vmem:[%s2127_s4 + $0x8] sm:$0xff]  }
 0x40a   : > { %1506 = vmatmul.mubr.msk.bf16.vlgmr.msra.gmra.mxu1 %vm545_vm3, %v542_v41  ;;  %v875_v43 = vsel %vm545_vm3, %v777_v42, 0  ;;  %v1077_v41 = vrot.slane %v1933_v7, %v1076_v39 }
 0x40b   : > { %1510 = vmatpush3.bf16.xpose.msra.mxu0 %v875_v43  ;;  %1517 = vmatprep.mubr.msk.bf16.mxu1 %vm1758_vm0, %v1757_v0  ;;  %v1082_v43 = vrot.slane %v1933_v7, %v1081_v40 }
 0x40c   : > { %1521 = vmatprep.subr.bf16.mxu0 %v1757_v0 }
 0x40d   : > { %v1627_v46 = vpop.eup %1626 }
 0x40e   : > { %v774_v47 = vmul.f32 %v1627_v46, %v1619_v20 }
 0x410   : > { %v778_v50 = vpack.c.bf16 %v774_v47, %v774_v47  ;;  %v1260_v51 = vsel %vm545_vm3, %v774_v47, 0.0  ;;  %v1611_v47 = vld [vmem:[%s2127_s4] sm:$0xff]  }
 0x411   : > { %v1261_v52 = vadd.f32 %v1260_v51, %v1259_v48  ;;  %v1091_v48 = vsub.s32 4, %v1927_v5 }
 0x412   : > { %1512 = vmatmul.mubr.msk.bf16.vlgmr.msra.gmra.mxu0 %vm545_vm3, %v543_v49  ;;  %v921_v53 = vsel %vm545_vm3, %v778_v50, 0 }
 0x413   : > { %1516 = vmatpush3.bf16.xpose.msra.mxu1 %v921_v53  ;;  %v1262_v54 = vmul.f32 0.25, %v1261_v52  ;;  %1525 = vmatprep.mubr.msk.bf16.mxu0 %vm1758_vm0, %v1757_v0  ;;  %v1092_v49 = vrot.slane %v1933_v7, %v1091_v48 }
 0x414   : > { %1529 = vmatprep.subr.bf16.mxu1 %v1757_v0  ;;  %1522 = vmatpush3.bf16.msra.mxu0 %v1604_v55 }
 0x415   : > { %1263 = vst.msk [vmem:[%s2002_s19] sm:$0xff] %vm545_vm3, %v1262_v54  ;;  %1523 = vmatprep.subr.bf16.mxu0 %v1757_v0 }
 0x418   : > { %1524 = vmatpush3.bf16.msra.mxu0 %v1605_v56 }
 0x419   : > { %1537 = vmatprep.subr.bf16.mxu0 %v1757_v0 }
 0x41a   : > { %1518 = vmatmul.mubr.msk.bf16.vlgmr.msra.gmra.mxu1 %vm545_vm3, %v544_v26 }
 0x41b   : > { %1533 = vmatprep.mubr.msk.bf16.mxu1 %vm1758_vm0, %v1757_v0  ;;  %1530 = vmatpush3.bf16.msra.mxu1 %v1606_v3 }
 0x41c   : > { %1531 = vmatprep.subr.bf16.mxu1 %v1757_v0 }
 0x41f   : > { %1532 = vmatpush3.bf16.msra.mxu1 %v1607_v33 }
 0x4c2   : > { %v819_v27 = vpop.f32.mrf.mxu0 }
 0x4c3   : > { %963 = vxpose.xlu1.b32.start [1/4] (short) (narrow) %v819_v27, 8 }
 0x4c4   : > { %v1501_v57 = vpop.f32.mrf.mxu0 }
 0x4c6   : > { %v822_v58 = vpop.f32.mrf.mxu0 }
 0x4c8   : > { %v1502_v59 = vpop.f32.mrf.mxu0 }
 0x4ca   : > { %v865_v60 = vpop.f32.mrf.mxu1 }
 0x4cb   : > { %964 = vxpose.xlu1.b32.cont [2/4] (short) (narrow) %v865_v60, 8 }
 0x4cc   : > { %v1507_v61 = vpop.f32.mrf.mxu1 }
 0x4ce   : > { %v868_v62 = vpop.f32.mrf.mxu1 }
 0x4d0   : > { %v1508_v63 = vpop.f32.mrf.mxu1 }
 0x4d2   : > { %v911_v1 = vpop.f32.mrf.mxu0 }
 0x4d3   : > { %965 = vxpose.xlu1.b32.cont [3/4] (short) (narrow) %v911_v1, 8 }
 0x4d4   : > { %v1513_v2 = vpop.f32.mrf.mxu0 }
 0x4d6   : > { %v914_v4 = vpop.f32.mrf.mxu0 }
 0x4d8   : > { %v1514_v6 = vpop.f32.mrf.mxu0 }
 0x4da   : > { %v957_v8 = vpop.f32.mrf.mxu1 }
 0x4db   : > { %966 = vxpose.xlu1.b32.end [4/4] (short) (narrow) %v957_v8, 8 }
 0x4dc   : > { %v1519_v9 = vpop.f32.mrf.mxu1 }
 0x4de   : > { %v960_v10 = vpop.f32.mrf.mxu1 }
 0x4e0   : > { %v1520_v11 = vpop.f32.mrf.mxu1 }
 0x54b   : > { %v979_v12 = vpop.trf.xlu1 }
 0x54c   : > { %v995_v13 = vpack.c.bf16 %v979_v12, %v979_v12 }
 0x54e   : > { %1526 = vmatmul.mubr.msk.bf16.vlgmr.msra.gmra.mxu0 %vm329_vm1, %v995_v13 }
 0x54f   : > { %1545 = vmatprep.mubr.msk.bf16.mxu0 %vm1758_vm0, %v1757_v0  ;;  %1538 = vmatpush3.bf16.msra.mxu0 %v1608_v34 }
 0x550   : > { %1539 = vmatprep.subr.bf16.mxu0 %v1757_v0 }
 0x553   : > { %1540 = vmatpush3.bf16.msra.mxu0 %v1609_v35 }
 0x554   : > { %1541 = vmatprep.subr.bf16.mxu0 %v1757_v0 }
 0x557   : > { %1542 = vmatpush3.bf16.msra.mxu0 %v1610_v25 }
 0x558   : > { %1543 = vmatprep.subr.bf16.mxu0 %v1757_v0  ;;  %v1160_v0 = vsub.s32 5, %v1927_v5 }
 0x55a   : > { %v1161_v56 = vrot.slane %v1933_v7, %v1160_v0 }
 0x55b   : > { %1544 = vmatpush3.bf16.msra.mxu0 %v1611_v47 }
 0x60e   : > { %v1053_v17 = vpop.f32.mrf.mxu0 }
 0x60f   : > { %v1054_v18 = vadd.f32 %v1053_v17, %v1003_v15 }
 0x610   : > { %v1527_v19 = vpop.f32.mrf.mxu0 }
 0x611   : > { %v1059_v20 = vadd.f32 %v1054_v18, %v307_v16 }
 0x612   : > { %v1056_v21 = vpop.f32.mrf.mxu0 }
 0x613   : > { %v1060_v22 = vsel %vm329_vm1, %v1059_v20, 0.0 }
 0x614   : > { %v1528_v23 = vpop.f32.mrf.mxu0  ;;  %1061 = vadd.xlane.f32.xlu0 %v1060_v22 }
 0x69d   : > { %v1062_v28 = vpop.xlane.xlu0 %1061 }
 0x69e   : > { %v1064_v29 = vmul.f32 0.03125, %v1062_v28 }
 0x6a0   : > { %v1065_v30 = vsub.f32 %v1059_v20, %v1064_v29 }
 0x6a2   : > { %v1066_v31 = vmul.f32 %v1065_v30, %v1065_v30 }
 0x6a4   : > { %v1067_v32 = vsel %vm329_vm1, %v1066_v31, 0.0 }
 0x6a5   : > { %1068 = vadd.xlane.f32.xlu0 %v1067_v32 }
 0x72e   : > { %v1069_v36 = vpop.xlane.xlu0 %1068 }
 0x72f   : > { %v1070_v37 = vmul.f32 0.03125, %v1069_v36 }
 0x731   : > { %v1071_v38 = vadd.f32 1e-05, %v1070_v37 }
 0x733   : > { %1628 = vrsqrt.f32 %v1071_v38 }
 0x740   : > { %v1629_v42 = vpop.eup %1628 }
 0x741   : > { %v1073_v24 = vmul.f32 %v1629_v42, %v1065_v30 }
 0x743   : > { %v1078_v44 = vmul.f32 %v1077_v41, %v1073_v24 }
 0x745   : > { %v1083_v45 = vadd.f32 %v1082_v43, %v1078_v44 }
 0x747   : > { %v1084_v46 = vpack.c.bf16 %v1083_v45, %v1083_v45 }
 0x749   : > { %1534 = vmatmul.mubr.msk.bf16.vlgmr.msra.gmra.mxu1 %vm329_vm1, %v1084_v46 }
 0x809   : > { %v1142_v50 = vpop.f32.mrf.mxu1 }
 0x80a   : > { %v1143_v51 = vadd.f32 %v1142_v50, %v1092_v49 }
 0x80b   : > { %v1535_v52 = vpop.f32.mrf.mxu1 }
 0x80c   : > { %v1148_v53 = vmax.f32 %v1143_v51, 0.0 }
 0x80d   : > { %v1145_v54 = vpop.f32.mrf.mxu1 }
 0x80e   : > { %v1149_v26 = vpack.c.bf16 %v1148_v53, %v1148_v53 }
 0x80f   : > { %v1536_v55 = vpop.f32.mrf.mxu1 }
 0x810   : > { %1546 = vmatmul.mubr.msk.bf16.vlgmr.msra.gmra.mxu0 %vm1186_vm4, %v1149_v26 }
 0x8d0   : > { %v1224_v27 = vpop.f32.mrf.mxu0 }
 0x8d1   : > { %v1225_v57 = vadd.f32 %v1224_v27, %v1161_v56 }
 0x8d2   : > { %v1547_v58 = vpop.f32.mrf.mxu0 }
 0x8d3   : > { %v1230_v59 = vadd.f32 %v1225_v57, %v1083_v45 }
 0x8d4   : > { %v1227_v60 = vpop.f32.mrf.mxu0 }
 0x8d5   : > { %v1231_v61 = vsel %vm329_vm1, %v1230_v59, 0.0 }
 0x8d6   : > { %1232 = vadd.xlane.f32.xlu0 %v1231_v61  ;;  %v1548_v62 = vpop.f32.mrf.mxu0 }
 0x95f   : > { %v1233_v63 = vpop.xlane.xlu0 %1232 }
 0x960   : > { %v1234_v1 = vmul.f32 0.03125, %v1233_v63 }
 0x962   : > { %v1235_v2 = vsub.f32 %v1230_v59, %v1234_v1 }
 0x964   : > { %v1236_v4 = vmul.f32 %v1235_v2, %v1235_v2 }
 0x966   : > { %v1237_v6 = vsel %vm329_vm1, %v1236_v4, 0.0 }
 0x967   : > { %1238 = vadd.xlane.f32.xlu0 %v1237_v6 }
 0x968   : > { %1673 = shalt.err (!%p1670_p10)
}
 0x969   : > { %s1674_s17 = scalar_lea.hbm %s1294_s12, 128  ;;  %s1678_s23 = scalar_lea.hbm %s2130_s7, 256 }
 0x96a   : > { %p1675_p2 = scmp.ne.s32.totalorder %s1294_s12, %s1674_s17  ;;  %p1679_p7 = scmp.lt.s32.totalorder %s1294_s12, %s2130_s7 }
 0x96b   : > { %p1680_p0 = scmp.lt.s32.totalorder %s1678_s23, %s1674_s17 }
 0x96c   : > { %p1676_p4 = pnand %p1675_p2, %p2143_p12 }
 0x96d   : > { %p1681_p6 = por %p1680_p0, %p1679_p7 }
 0x96e   : > { %p1677_p9 = pneg %p1676_p4 }
 0x970   : > { %p1682_p11 = pnand %p1681_p6, %p1677_p9 }
 0x972   : > { %1685 = shalt.err (!%p1682_p11)
}
 0x973   : > { %1552 = dma.vmem_to_hbm [thread:$0]  (%p2143_p12), %s1297_s29, 128, %s1294_s12, %s1270_s18   ;;  %v1246_v11 = vsub.s32 6, %v1927_v5  ;;  %v1251_v12 = vsub.s32 7, %v1927_v5 }
 0x974   : > { %s2144_s15 = sshll.u32 %s1899_s8, 3  ;;  %s2145_s12 = sshll.u32 %s1822_s28, 7 }
 0x975   : > { %v1247_v13 = vrot.slane %v1933_v7, %v1246_v11  ;;  %v1252_v16 = vrot.slane %v1933_v7, %v1251_v12  ;;  %s297_s20 = scalar_lea.vmem [#allocation5], %s2144_s15  ;;  %s1281_s9 = scalar_lea.hbm %s2129_s6, %s2145_s12 }
 0x976   : > { %s1283_s21 = sshll.u32 %s297_s20, 4  ;;  %s1265_s16 = scalar_lea.sflag [#allocation4], %s1899_s8  ;;  %s1284_s21 = int_to_ptr.vmem [resolvable:$true] %s1283_s21 }
 0x977   : > { %s1686_s11 = scalar_lea.vmem %s1284_s21, 128  ;;  %s1760_s17 = smov [#allocation5]  }
 0x978   : > { %p1687_p13 = scmp.ne.s32.totalorder %s1284_s21, %s1686_s11  ;;  %s1690_s19 = sshll.u32 %s1760_s17, 4  ;;  %s1691_s19 = int_to_ptr.vmem [resolvable:$false] %s1690_s19 }
 0x979   : > { %s1692_s22 = scalar_lea.vmem %s1691_s19, 256  ;;  %p1693_p5 = scmp.lt.s32.totalorder %s1284_s21, %s1691_s19 }
 0x97a   : > { %p1688_p1 = pnand %p1687_p13, %p2143_p12  ;;  %p1694_p8 = scmp.lt.s32.totalorder %s1692_s22, %s1686_s11 }
 0x97c   : > { %p1689_p3 = pneg %p1688_p1  ;;  %p1695_p10 = por %p1694_p8, %p1693_p5 }
 0x97e   : > { %p1696_p2 = pnand %p1695_p10, %p1689_p3 }
 0x9f0   : > { %v1239_v8 = vpop.xlane.xlu0 %1238 }
 0x9f1   : > { %v1240_v9 = vmul.f32 0.03125, %v1239_v8 }
 0x9f3   : > { %v1241_v10 = vadd.f32 1e-05, %v1240_v9 }
 0x9f5   : > { %1630 = vrsqrt.f32 %v1241_v10 }
 0xa02   : > { %v1631_v14 = vpop.eup %1630 }
 0xa03   : > { %v1243_v15 = vmul.f32 %v1631_v14, %v1235_v2 }
 0xa05   : > { %v1248_v17 = vmul.f32 %v1247_v13, %v1243_v15 }
 0xa07   : > { %v1253_v18 = vadd.f32 %v1252_v16, %v1248_v17 }
 0xa09   : > { %1254 = vst.msk [vmem:[%s297_s20] sm:$0xff] %vm329_vm1, %v1253_v18 }
 0xa0a   : > { %1699 = shalt.err (!%p1696_p2)
}
 0xa0b   : > { %s1700_s28 = scalar_lea.hbm %s1281_s9, 128  ;;  %s1704_s15 = scalar_lea.hbm %s2129_s6, 256 }
 0xa0c   : > { %p1701_p4 = scmp.ne.s32.totalorder %s1281_s9, %s1700_s28  ;;  %p1705_p0 = scmp.lt.s32.totalorder %s1281_s9, %s2129_s6 }
 0xa0d   : > { %p1706_p6 = scmp.lt.s32.totalorder %s1704_s15, %s1700_s28 }
 0xa0e   : > { %p1702_p9 = pnand %p1701_p4, %p2143_p12 }
 0xa0f   : > { %p1707_p11 = por %p1706_p6, %p1705_p0 }
 0xa10   : > { %p1703_p7 = pneg %p1702_p9 }
 0xa12   : > { %p1708_p13 = pnand %p1707_p11, %p1703_p7 }
 0xa14   : > { %1711 = shalt.err (!%p1708_p13)
}
 0xa15   : > { %1551 = dma.vmem_to_hbm [thread:$0]  (%p2143_p12), %s1284_s21, 128, %s1281_s9, %s1265_s16  }
 0xa16 PF: > { %s1308_s29 = sand.u32 1, %s1742_s24   ;;  %p2146_p1 = scmp.ne.s32.totalorder %s2138_s14, 0 }
 0xa17   : > { %p2147_p3 = scmp.ge.s32.totalorder %s1754_s27, 2  ;;  %s1309_s18 = scalar_lea.sflag [#allocation4], %s1308_s29 }
 0xa19   : > { %p1560_p5 = pnand %p2147_p3, %p2146_p1 }
 0xa1b   : > { %p1561_p8 = pneg %p1560_p5 }
 0xa1d   : > { %1733 = dma.done.wait (%p1561_p8), %s1309_s18, 128  }
 0xa1e   : > { %1735 = vsyncadd (%p1561_p8), %s1309_s18, 4294967168  ;;  %s1318_s11 = scalar_lea.sflag [#allocation7], %s1308_s29 }
 0xa1f   : > { %1737 = dma.done.wait (%p1561_p8), %s1318_s11, 128  }
 0xa20   : > { %1739 = vsyncadd (%p1561_p8), %s1318_s11, 4294967168  ;;  %p24_p12 = scmp.ge.s32.totalorder %s1826_s30, 4   ;;  %s2148_s24 = smov %s1746_s25 }
 0xa21   : > { %s2149_s25 = smov %s1750_s26  ;;  %s2150_s26 = smov %s1838_s10 }
 0xa22   : > { %s2151_s27 = smov %s1826_s30  ;;  %26 = sbr.rel (!%p24_p12) target bundleno = 7 (0x7), region = 106 }
 0xa27   :  { %1323 = vsyncpa [#allocation3], 1 }
 0xa28   :  { %1325 = vsyncpa [#allocation3 + $0x1], 1 }
 0xa29   :  { %1326 = vsyncpa [#allocation4], 1 }
 0xa2a   :  { %1328 = vsyncpa [#allocation4 + $0x1], 1 }
 0xa2b   :  { %1329 = vsyncpa [#allocation7], 1 }
 0xa2c   :  { %1331 = vsyncpa [#allocation7 + $0x1], 1 }

</bundles_post_ra>
